<compile_context>
chip_gen: v5e
topology: v5e:2x2
jax: 0.10.0
libtpu: 0.0.40
codegen_flags: <defaults>
</compile_context>

<pallas_src>
import jax
import jax.numpy as jnp
from jax.experimental import pallas as pl
from jax.experimental.pallas import tpu as pltpu

EPS = 1e-5
LANE = 128


def _round_up(n, m):
    return ((n + m - 1) // m) * m


def _matmul_bn(h, w, bn, *, relu):
    """h: (N, d_in) f32, w: (d_in, d_out) bf16, bn: (2, d_out) f32 [gamma; beta].

    Computes BN(h @ w) with training-mode batch statistics, bias-free (the
    Linear bias cancels under BN), folded into a single scale/shift FMA.
    """
    acc = jnp.dot(h.astype(jnp.bfloat16), w, preferred_element_type=jnp.float32)
    inv_n = 1.0 / acc.shape[0]
    mean = jnp.sum(acc, axis=0, keepdims=True) * inv_n
    meansq = jnp.sum(acc * acc, axis=0, keepdims=True) * inv_n
    var = jnp.maximum(meansq - mean * mean, 0.0)       # biased variance, one pass
    gamma = bn[0:1, :]
    beta = bn[1:2, :]
    scale = gamma * jax.lax.rsqrt(var + EPS)
    shift = beta - mean * scale
    out = acc * scale + shift
    if relu:
        out = jnp.maximum(out, 0.0)
    return out


def projection_mlp_kernel(x_ref, w1_ref, w2_hbm, w3_hbm,
                          bn1_ref, bn2_ref, bn3_ref,
                          o_ref,
                          w2_vmem, w3_vmem, sem):
    # Kick off layer-2/3 weight DMAs immediately so they overlap the
    # layer-1 / layer-2 matmuls (manual prefetch; grid=(1,) has no auto
    # pipelining to hide them otherwise).
    cp_w2 = pltpu.make_async_copy(w2_hbm, w2_vmem, sem.at[0])
    cp_w3 = pltpu.make_async_copy(w3_hbm, w3_vmem, sem.at[1])
    cp_w2.start()
    cp_w3.start()

    h = x_ref[...].astype(jnp.float32)

    # Block 1: Linear (no bias) -> BN -> ReLU
    h = _matmul_bn(h, w1_ref[...], bn1_ref[...], relu=True)

    # Block 2: Linear (no bias) -> BN -> ReLU
    cp_w2.wait()
    h = _matmul_bn(h, w2_vmem[...], bn2_ref[...], relu=True)

    # Block 3: Linear (no bias) -> BN
    cp_w3.wait()
    h = _matmul_bn(h, w3_vmem[...], bn3_ref[...], relu=False)

    o_ref[...] = h.astype(o_ref.dtype)


def projection_mlp(x, params):
    """x: (N, input_dim) f32. params: dict with bf16 pre-transposed weights
    w1/w2/w3 of shape (d_in, d_out) and f32 gamma/beta g*/be* of shape (1, d)."""
    n, d_in = x.shape
    d_hid = params["w1"].shape[1]
    d_out = params["w3"].shape[1]

    # Pad feature dims to full 128-lane tiles (zero padding is exact for the
    # matmuls; padded BN columns come out as 0 and are sliced away). The batch
    # dim is NOT padded — BN statistics must use the true batch.
    d_in_p = _round_up(d_in, LANE)
    d_hid_p = _round_up(d_hid, LANE)
    d_out_p = _round_up(d_out, LANE)

    def pad2(a, rows, cols):
        return jnp.pad(a, ((0, rows - a.shape[0]), (0, cols - a.shape[1])))

    x_p = pad2(x, n, d_in_p)
    w1_p = pad2(params["w1"], d_in_p, d_hid_p)
    w2_p = pad2(params["w2"], d_hid_p, d_hid_p)
    w3_p = pad2(params["w3"], d_hid_p, d_out_p)

    def bn_pack(g, b, d_p):
        return pad2(jnp.concatenate([g, b], axis=0).astype(jnp.float32), 2, d_p)

    bn1 = bn_pack(params["g1"], params["be1"], d_hid_p)
    bn2 = bn_pack(params["g2"], params["be2"], d_hid_p)
    bn3 = bn_pack(params["g3"], params["be3"], d_out_p)

    # Rough VMEM budget (double-buffer margin) with an explicit cap that is
    # safe on v5e/v6e (128 MiB) and v7x (64 MiB).
    wbytes = jnp.dtype(w1_p.dtype).itemsize
    est = (2 * (n * d_in_p * 4 + d_in_p * d_hid_p * wbytes + n * d_out_p * 4)
           + d_hid_p * d_hid_p * wbytes + d_hid_p * d_out_p * wbytes
           + 3 * 8 * max(d_hid_p, d_out_p) * 4
           + 3 * n * max(d_in_p, d_hid_p, d_out_p) * 4)
    vmem_limit = int(min(max(2 * est, 16 * 1024 * 1024), 56 * 1024 * 1024))

    def full(a):
        return pl.BlockSpec(a.shape, lambda i: (0, 0))

    any_spec = pl.BlockSpec(memory_space=pl.ANY)

    out_padded = pl.pallas_call(
        projection_mlp_kernel,
        out_shape=jax.ShapeDtypeStruct((n, d_out_p), x.dtype),
        grid_spec=pltpu.PrefetchScalarGridSpec(
            num_scalar_prefetch=0,
            grid=(1,),
            in_specs=[full(x_p), full(w1_p), any_spec, any_spec,
                      full(bn1), full(bn2), full(bn3)],
            out_specs=pl.BlockSpec((n, d_out_p), lambda i: (0, 0)),
            scratch_shapes=[
                pltpu.VMEM((d_hid_p, d_hid_p), w2_p.dtype),
                pltpu.VMEM((d_hid_p, d_out_p), w3_p.dtype),
                pltpu.SemaphoreType.DMA((2,)),
            ],
        ),
        compiler_params=pltpu.CompilerParams(
            dimension_semantics=("arbitrary",),
            vmem_limit_bytes=vmem_limit),
    )(x_p, w1_p, w2_p, w3_p, bn1, bn2, bn3)

    return out_padded[:, :d_out]


def init_params(key, input_dim, hidden_dim, output_dim):
    """Synthetic params matching nn.Linear / nn.BatchNorm1d shapes & init."""
    ks = jax.random.split(key, 6)

    def lin(kw, kb, d_in, d_out):
        scale = 1.0 / jnp.sqrt(jnp.float32(d_in))
        w = jax.random.uniform(kw, (d_out, d_in), jnp.float32, -scale, scale)
        b = jax.random.uniform(kb, (d_out,), jnp.float32, -scale, scale)
        # Pre-transposed to (d_in, d_out), stored bf16 for native MXU feeds.
        return w.T.astype(jnp.bfloat16), b.reshape(1, d_out)

    w1, b1 = lin(ks[0], ks[1], input_dim, hidden_dim)
    w2, b2 = lin(ks[2], ks[3], hidden_dim, hidden_dim)
    w3, b3 = lin(ks[4], ks[5], hidden_dim, output_dim)

    def bn(dim):
        return jnp.ones((1, dim), jnp.float32), jnp.zeros((1, dim), jnp.float32)

    g1, be1 = bn(hidden_dim)
    g2, be2 = bn(hidden_dim)
    g3, be3 = bn(output_dim)

    return dict(w1=w1, b1=b1, g1=g1, be1=be1,
                w2=w2, b2=b2, g2=g2, be2=be2,
                w3=w3, b3=b3, g3=g3, be3=be3)


def reference_forward(x, p):
    """Pure-JAX reference mirroring the PyTorch module in training mode.
    Keeps the Linear biases (which the kernel drops) to demonstrate they
    cancel exactly under batch-stat BN. Uses the same bf16 matmul inputs /
    f32 accumulation as the kernel."""
    def lin(h, w, b):
        return jnp.dot(h.astype(jnp.bfloat16), w,
                       preferred_element_type=jnp.float32) + b

    def bn(h, g, b):
        m = jnp.mean(h, axis=0, keepdims=True)
        v = jnp.mean((h - m) ** 2, axis=0, keepdims=True)
        return (h - m) / jnp.sqrt(v + EPS) * g + b

    h = jnp.maximum(bn(lin(x, p["w1"], p["b1"]), p["g1"], p["be1"]), 0.0)
    h = jnp.maximum(bn(lin(h, p["w2"], p["b2"]), p["g2"], p["be2"]), 0.0)
    return bn(lin(h, p["w3"], p["b3"]), p["g3"], p["be3"])


if __name__ == "__main__":
    key = jax.random.PRNGKey(0)
    kx, kp = jax.random.split(key)

    # Small demo shapes; deliberately non-128-aligned feature dims to exercise
    # the wrapper's lane padding / output slicing path.
    batch, input_dim, hidden_dim, output_dim = 32, 48, 96, 80
    x = jax.random.normal(kx, (batch, input_dim), jnp.float32)
    params = init_params(kp, input_dim, hidden_dim, output_dim)

    out = projection_mlp(x, params)
    out = jax.block_until_ready(out)

    ref = reference_forward(x, params)
    assert out.shape == (batch, output_dim), out.shape
    max_err = jnp.max(jnp.abs(out - ref))
    assert jnp.allclose(out, ref, atol=1e-2, rtol=1e-2), f"max err {max_err}"

    print("KERNEL_OK")
</pallas_src>

<mosaic_0001>
module attributes {stable_mosaic.version = 11 : i64} {
  func.func @projection_mlp_kernel(%arg0: i32, %arg1: memref<32x128xf32, #tpu.memory_space<vmem>>, %arg2: memref<128x128xbf16, #tpu.memory_space<vmem>>, %arg3: memref<128x128xbf16, #tpu.memory_space<any>>, %arg4: memref<128x128xbf16, #tpu.memory_space<any>>, %arg5: memref<2x128xf32, #tpu.memory_space<vmem>>, %arg6: memref<2x128xf32, #tpu.memory_space<vmem>>, %arg7: memref<2x128xf32, #tpu.memory_space<vmem>>, %arg8: memref<32x128xf32, #tpu.memory_space<vmem>>, %arg9: memref<128x128xbf16, #tpu.memory_space<vmem>>, %arg10: memref<128x128xbf16, #tpu.memory_space<vmem>>, %arg11: memref<2x!tpu.dma_semaphore, #tpu.memory_space<semaphore_mem>>) attributes {dimension_semantics = [#tpu.dimension_semantics<arbitrary>], iteration_bounds = array<i64: 1>, scalar_prefetch = 0 : i64, scratch_operands = 3 : i64, tpu.core_type = #tpu.core_type<tc>, window_params = [{pipeline_mode = #tpu.pipeline_mode<synchronous>, transform_indices = @transform_0, window_bounds = array<i64: 32, 128>}, {pipeline_mode = #tpu.pipeline_mode<synchronous>, transform_indices = @transform_1, window_bounds = array<i64: 128, 128>}, {}, {}, {pipeline_mode = #tpu.pipeline_mode<synchronous>, transform_indices = @transform_4, window_bounds = array<i64: 2, 128>}, {pipeline_mode = #tpu.pipeline_mode<synchronous>, transform_indices = @transform_5, window_bounds = array<i64: 2, 128>}, {pipeline_mode = #tpu.pipeline_mode<synchronous>, transform_indices = @transform_6, window_bounds = array<i64: 2, 128>}, {pipeline_mode = #tpu.pipeline_mode<synchronous>, transform_indices = @transform_7, window_bounds = array<i64: 32, 128>}]} {
    %c0_i32 = arith.constant 0 : i32
    %0 = tpu.memref_slice %arg11[%c0_i32] : memref<2x!tpu.dma_semaphore, #tpu.memory_space<semaphore_mem>> -> memref<1x!tpu.dma_semaphore, #tpu.memory_space<semaphore_mem>>
    %1 = tpu.memref_squeeze %0 : memref<1x!tpu.dma_semaphore, #tpu.memory_space<semaphore_mem>> -> memref<!tpu.dma_semaphore, #tpu.memory_space<semaphore_mem>>
    tpu.enqueue_dma source(%arg3 : memref<128x128xbf16, #tpu.memory_space<any>>) target(%arg9 : memref<128x128xbf16, #tpu.memory_space<vmem>>) target_semaphore(%1 : memref<!tpu.dma_semaphore, #tpu.memory_space<semaphore_mem>>)
    %c1_i32 = arith.constant 1 : i32
    %2 = tpu.memref_slice %arg11[%c1_i32] : memref<2x!tpu.dma_semaphore, #tpu.memory_space<semaphore_mem>> -> memref<1x!tpu.dma_semaphore, #tpu.memory_space<semaphore_mem>>
    %3 = tpu.memref_squeeze %2 : memref<1x!tpu.dma_semaphore, #tpu.memory_space<semaphore_mem>> -> memref<!tpu.dma_semaphore, #tpu.memory_space<semaphore_mem>>
    tpu.enqueue_dma source(%arg4 : memref<128x128xbf16, #tpu.memory_space<any>>) target(%arg10 : memref<128x128xbf16, #tpu.memory_space<vmem>>) target_semaphore(%3 : memref<!tpu.dma_semaphore, #tpu.memory_space<semaphore_mem>>)
    %c0 = arith.constant 0 : index
    %c0_0 = arith.constant 0 : index
    %4 = vector.load %arg1[%c0, %c0_0] : memref<32x128xf32, #tpu.memory_space<vmem>>, vector<32x128xf32>
    %c0_1 = arith.constant 0 : index
    %c0_2 = arith.constant 0 : index
    %5 = vector.load %arg2[%c0_1, %c0_2] : memref<128x128xbf16, #tpu.memory_space<vmem>>, vector<128x128xbf16>
    %c0_3 = arith.constant 0 : index
    %c0_4 = arith.constant 0 : index
    %6 = vector.load %arg5[%c0_3, %c0_4] : memref<2x128xf32, #tpu.memory_space<vmem>>, vector<2x128xf32>
    %7 = arith.truncf %4 : vector<32x128xf32> to vector<32x128xbf16>
    %cst = arith.constant dense<0.000000e+00> : vector<32x128xf32>
    %8 = tpu.matmul %7, %5, %cst {dimension_numbers = #tpu.dot_dimension_numbers<[1], [0], [0], [1], [0, 0, 1, 1], [], []>} : vector<32x128xbf16>, vector<128x128xbf16>, vector<32x128xf32> -> vector<32x128xf32>
    %cst_5 = arith.constant dense<0.000000e+00> : vector<128xf32>
    %9 = vector.multi_reduction <add>, %8, %cst_5 [0] : vector<32x128xf32> to vector<128xf32>
    %10 = vector.shape_cast %9 : vector<128xf32> to vector<1x128xf32>
    %cst_6 = arith.constant 3.125000e-02 : f32
    %11 = vector.broadcast %cst_6 : f32 to vector<1x128xf32>
    %12 = arith.mulf %10, %11 : vector<1x128xf32>
    %13 = arith.mulf %8, %8 : vector<32x128xf32>
    %cst_7 = arith.constant dense<0.000000e+00> : vector<128xf32>
    %14 = vector.multi_reduction <add>, %13, %cst_7 [0] : vector<32x128xf32> to vector<128xf32>
    %15 = vector.shape_cast %14 : vector<128xf32> to vector<1x128xf32>
    %cst_8 = arith.constant 3.125000e-02 : f32
    %16 = vector.broadcast %cst_8 : f32 to vector<1x128xf32>
    %17 = arith.mulf %15, %16 : vector<1x128xf32>
    %18 = arith.mulf %12, %12 : vector<1x128xf32>
    %19 = arith.subf %17, %18 : vector<1x128xf32>
    %cst_9 = arith.constant 0.000000e+00 : f32
    %20 = vector.broadcast %cst_9 : f32 to vector<1x128xf32>
    %21 = arith.maximumf %19, %20 : vector<1x128xf32>
    %22 = vector.extract_strided_slice %6 {offsets = [0, 0], sizes = [1, 128], strides = [1, 1]} : vector<2x128xf32> to vector<1x128xf32>
    %23 = vector.extract_strided_slice %6 {offsets = [1, 0], sizes = [1, 128], strides = [1, 1]} : vector<2x128xf32> to vector<1x128xf32>
    %cst_10 = arith.constant 9.99999974E-6 : f32
    %24 = vector.broadcast %cst_10 : f32 to vector<1x128xf32>
    %25 = arith.addf %21, %24 : vector<1x128xf32>
    %26 = math.rsqrt %25 : vector<1x128xf32>
    %27 = arith.mulf %22, %26 : vector<1x128xf32>
    %28 = arith.mulf %12, %27 : vector<1x128xf32>
    %29 = arith.subf %23, %28 : vector<1x128xf32>
    %30 = vector.broadcast %27 : vector<1x128xf32> to vector<32x128xf32>
    %31 = arith.mulf %8, %30 : vector<32x128xf32>
    %32 = vector.broadcast %29 : vector<1x128xf32> to vector<32x128xf32>
    %33 = arith.addf %31, %32 : vector<32x128xf32>
    %cst_11 = arith.constant 0.000000e+00 : f32
    %34 = vector.broadcast %cst_11 : f32 to vector<32x128xf32>
    %35 = arith.maximumf %33, %34 : vector<32x128xf32>
    %c0_i32_12 = arith.constant 0 : i32
    %36 = tpu.memref_slice %arg11[%c0_i32_12] : memref<2x!tpu.dma_semaphore, #tpu.memory_space<semaphore_mem>> -> memref<1x!tpu.dma_semaphore, #tpu.memory_space<semaphore_mem>>
    %37 = tpu.memref_squeeze %36 : memref<1x!tpu.dma_semaphore, #tpu.memory_space<semaphore_mem>> -> memref<!tpu.dma_semaphore, #tpu.memory_space<semaphore_mem>>
    tpu.wait_dma2 semaphore(%37 : memref<!tpu.dma_semaphore, #tpu.memory_space<semaphore_mem>>) src(%arg3 : memref<128x128xbf16, #tpu.memory_space<any>>) dst(%arg9 : memref<128x128xbf16, #tpu.memory_space<vmem>>)
    %c0_13 = arith.constant 0 : index
    %c0_14 = arith.constant 0 : index
    %38 = vector.load %arg9[%c0_13, %c0_14] : memref<128x128xbf16, #tpu.memory_space<vmem>>, vector<128x128xbf16>
    %c0_15 = arith.constant 0 : index
    %c0_16 = arith.constant 0 : index
    %39 = vector.load %arg6[%c0_15, %c0_16] : memref<2x128xf32, #tpu.memory_space<vmem>>, vector<2x128xf32>
    %40 = arith.truncf %35 : vector<32x128xf32> to vector<32x128xbf16>
    %cst_17 = arith.constant dense<0.000000e+00> : vector<32x128xf32>
    %41 = tpu.matmul %40, %38, %cst_17 {dimension_numbers = #tpu.dot_dimension_numbers<[1], [0], [0], [1], [0, 0, 1, 1], [], []>} : vector<32x128xbf16>, vector<128x128xbf16>, vector<32x128xf32> -> vector<32x128xf32>
    %cst_18 = arith.constant dense<0.000000e+00> : vector<128xf32>
    %42 = vector.multi_reduction <add>, %41, %cst_18 [0] : vector<32x128xf32> to vector<128xf32>
    %43 = vector.shape_cast %42 : vector<128xf32> to vector<1x128xf32>
    %cst_19 = arith.constant 3.125000e-02 : f32
    %44 = vector.broadcast %cst_19 : f32 to vector<1x128xf32>
    %45 = arith.mulf %43, %44 : vector<1x128xf32>
    %46 = arith.mulf %41, %41 : vector<32x128xf32>
    %cst_20 = arith.constant dense<0.000000e+00> : vector<128xf32>
    %47 = vector.multi_reduction <add>, %46, %cst_20 [0] : vector<32x128xf32> to vector<128xf32>
    %48 = vector.shape_cast %47 : vector<128xf32> to vector<1x128xf32>
    %cst_21 = arith.constant 3.125000e-02 : f32
    %49 = vector.broadcast %cst_21 : f32 to vector<1x128xf32>
    %50 = arith.mulf %48, %49 : vector<1x128xf32>
    %51 = arith.mulf %45, %45 : vector<1x128xf32>
    %52 = arith.subf %50, %51 : vector<1x128xf32>
    %cst_22 = arith.constant 0.000000e+00 : f32
    %53 = vector.broadcast %cst_22 : f32 to vector<1x128xf32>
    %54 = arith.maximumf %52, %53 : vector<1x128xf32>
    %55 = vector.extract_strided_slice %39 {offsets = [0, 0], sizes = [1, 128], strides = [1, 1]} : vector<2x128xf32> to vector<1x128xf32>
    %56 = vector.extract_strided_slice %39 {offsets = [1, 0], sizes = [1, 128], strides = [1, 1]} : vector<2x128xf32> to vector<1x128xf32>
    %cst_23 = arith.constant 9.99999974E-6 : f32
    %57 = vector.broadcast %cst_23 : f32 to vector<1x128xf32>
    %58 = arith.addf %54, %57 : vector<1x128xf32>
    %59 = math.rsqrt %58 : vector<1x128xf32>
    %60 = arith.mulf %55, %59 : vector<1x128xf32>
    %61 = arith.mulf %45, %60 : vector<1x128xf32>
    %62 = arith.subf %56, %61 : vector<1x128xf32>
    %63 = vector.broadcast %60 : vector<1x128xf32> to vector<32x128xf32>
    %64 = arith.mulf %41, %63 : vector<32x128xf32>
    %65 = vector.broadcast %62 : vector<1x128xf32> to vector<32x128xf32>
    %66 = arith.addf %64, %65 : vector<32x128xf32>
    %cst_24 = arith.constant 0.000000e+00 : f32
    %67 = vector.broadcast %cst_24 : f32 to vector<32x128xf32>
    %68 = arith.maximumf %66, %67 : vector<32x128xf32>
    %c1_i32_25 = arith.constant 1 : i32
    %69 = tpu.memref_slice %arg11[%c1_i32_25] : memref<2x!tpu.dma_semaphore, #tpu.memory_space<semaphore_mem>> -> memref<1x!tpu.dma_semaphore, #tpu.memory_space<semaphore_mem>>
    %70 = tpu.memref_squeeze %69 : memref<1x!tpu.dma_semaphore, #tpu.memory_space<semaphore_mem>> -> memref<!tpu.dma_semaphore, #tpu.memory_space<semaphore_mem>>
    tpu.wait_dma2 semaphore(%70 : memref<!tpu.dma_semaphore, #tpu.memory_space<semaphore_mem>>) src(%arg4 : memref<128x128xbf16, #tpu.memory_space<any>>) dst(%arg10 : memref<128x128xbf16, #tpu.memory_space<vmem>>)
    %c0_26 = arith.constant 0 : index
    %c0_27 = arith.constant 0 : index
    %71 = vector.load %arg10[%c0_26, %c0_27] : memref<128x128xbf16, #tpu.memory_space<vmem>>, vector<128x128xbf16>
    %c0_28 = arith.constant 0 : index
    %c0_29 = arith.constant 0 : index
    %72 = vector.load %arg7[%c0_28, %c0_29] : memref<2x128xf32, #tpu.memory_space<vmem>>, vector<2x128xf32>
    %73 = arith.truncf %68 : vector<32x128xf32> to vector<32x128xbf16>
    %cst_30 = arith.constant dense<0.000000e+00> : vector<32x128xf32>
    %74 = tpu.matmul %73, %71, %cst_30 {dimension_numbers = #tpu.dot_dimension_numbers<[1], [0], [0], [1], [0, 0, 1, 1], [], []>} : vector<32x128xbf16>, vector<128x128xbf16>, vector<32x128xf32> -> vector<32x128xf32>
    %cst_31 = arith.constant dense<0.000000e+00> : vector<128xf32>
    %75 = vector.multi_reduction <add>, %74, %cst_31 [0] : vector<32x128xf32> to vector<128xf32>
    %76 = vector.shape_cast %75 : vector<128xf32> to vector<1x128xf32>
    %cst_32 = arith.constant 3.125000e-02 : f32
    %77 = vector.broadcast %cst_32 : f32 to vector<1x128xf32>
    %78 = arith.mulf %76, %77 : vector<1x128xf32>
    %79 = arith.mulf %74, %74 : vector<32x128xf32>
    %cst_33 = arith.constant dense<0.000000e+00> : vector<128xf32>
    %80 = vector.multi_reduction <add>, %79, %cst_33 [0] : vector<32x128xf32> to vector<128xf32>
    %81 = vector.shape_cast %80 : vector<128xf32> to vector<1x128xf32>
    %cst_34 = arith.constant 3.125000e-02 : f32
    %82 = vector.broadcast %cst_34 : f32 to vector<1x128xf32>
    %83 = arith.mulf %81, %82 : vector<1x128xf32>
    %84 = arith.mulf %78, %78 : vector<1x128xf32>
    %85 = arith.subf %83, %84 : vector<1x128xf32>
    %cst_35 = arith.constant 0.000000e+00 : f32
    %86 = vector.broadcast %cst_35 : f32 to vector<1x128xf32>
    %87 = arith.maximumf %85, %86 : vector<1x128xf32>
    %88 = vector.extract_strided_slice %72 {offsets = [0, 0], sizes = [1, 128], strides = [1, 1]} : vector<2x128xf32> to vector<1x128xf32>
    %89 = vector.extract_strided_slice %72 {offsets = [1, 0], sizes = [1, 128], strides = [1, 1]} : vector<2x128xf32> to vector<1x128xf32>
    %cst_36 = arith.constant 9.99999974E-6 : f32
    %90 = vector.broadcast %cst_36 : f32 to vector<1x128xf32>
    %91 = arith.addf %87, %90 : vector<1x128xf32>
    %92 = math.rsqrt %91 : vector<1x128xf32>
    %93 = arith.mulf %88, %92 : vector<1x128xf32>
    %94 = arith.mulf %78, %93 : vector<1x128xf32>
    %95 = arith.subf %89, %94 : vector<1x128xf32>
    %96 = vector.broadcast %93 : vector<1x128xf32> to vector<32x128xf32>
    %97 = arith.mulf %74, %96 : vector<32x128xf32>
    %98 = vector.broadcast %95 : vector<1x128xf32> to vector<32x128xf32>
    %99 = arith.addf %97, %98 : vector<32x128xf32>
    %c0_37 = arith.constant 0 : index
    %c0_38 = arith.constant 0 : index
    %100 = vector.load %arg8[%c0_37, %c0_38] : memref<32x128xf32, #tpu.memory_space<vmem>>, vector<32x128xf32>
    tpu.vector_store %arg8[%c0_37, %c0_38], %99 {strides = array<i32>} : memref<32x128xf32, #tpu.memory_space<vmem>>, vector<32x128xf32>,
    return
  }
  func.func @transform_0(%arg0: i32) -> (i32, i32) {
    %c0_i32 = arith.constant 0 : i32
    %c0_i32_0 = arith.constant 0 : i32
    %c0_i32_1 = arith.constant 0 : i32
    return %c0_i32, %c0_i32_0 : i32, i32
  }
  func.func @transform_1(%arg0: i32) -> (i32, i32) {
    %c0_i32 = arith.constant 0 : i32
    %c0_i32_0 = arith.constant 0 : i32
    %c0_i32_1 = arith.constant 0 : i32
    return %c0_i32, %c0_i32_0 : i32, i32
  }
  func.func @transform_4(%arg0: i32) -> (i32, i32) {
    %c0_i32 = arith.constant 0 : i32
    %c0_i32_0 = arith.constant 0 : i32
    %c0_i32_1 = arith.constant 0 : i32
    return %c0_i32, %c0_i32_0 : i32, i32
  }
  func.func @transform_5(%arg0: i32) -> (i32, i32) {
    %c0_i32 = arith.constant 0 : i32
    %c0_i32_0 = arith.constant 0 : i32
    %c0_i32_1 = arith.constant 0 : i32
    return %c0_i32, %c0_i32_0 : i32, i32
  }
  func.func @transform_6(%arg0: i32) -> (i32, i32) {
    %c0_i32 = arith.constant 0 : i32
    %c0_i32_0 = arith.constant 0 : i32
    %c0_i32_1 = arith.constant 0 : i32
    return %c0_i32, %c0_i32_0 : i32, i32
  }
  func.func @transform_7(%arg0: i32) -> (i32, i32) {
    %c0_i32 = arith.constant 0 : i32
    %c0_i32_0 = arith.constant 0 : i32
    %c0_i32_1 = arith.constant 0 : i32
    return %c0_i32, %c0_i32_0 : i32, i32
  }
}

</mosaic_0001>

<bundles_post_ra>
// kernel: tpu_custom_call.1
= control target key start
LH: loop header
LB: loop body
LE: loop exit
PB: predicated region body
PF: predicated region fallthrough
CT: control target
= control target key end

     0   :  { %12 = vsyncpa [#allocation6], 0  ;;  %s950_s0 = inlined_call_operand.hbm [shape: f32[32,128], index: 0, kind: input, shape index: {}]   ;;  %s951_s1 = inlined_call_operand.hbm [shape: bf16[128,128], index: 1, kind: input, shape index: {}]   ;;  %s952_s2 = inlined_call_operand.hbm [shape: bf16[128,128], index: 2, kind: input, shape index: {}]   ;;  %s953_s3 = inlined_call_operand.hbm [shape: bf16[128,128], index: 3, kind: input, shape index: {}]   ;;  %s954_s4 = inlined_call_operand.vmem [shape: f32[2,128], index: 4, kind: input, shape index: {}]   ;;  %s955_s5 = inlined_call_operand.vmem [shape: f32[2,128], index: 5, kind: input, shape index: {}]   ;;  %s956_s6 = inlined_call_operand.hbm [shape: f32[2,128], index: 6, kind: input, shape index: {}]   ;;  %s957_s7 = inlined_call_operand.hbm [shape: f32[32,128], index: 7, kind: output, shape index: {}]  }
   0x1   :  { %13 = vsyncpa [#allocation9], 0  ;;  %s32_s26 = sshll.u32 %s951_s1, 4  ;;  %s33_s26 = int_to_ptr.hbm [resolvable:$true] %s32_s26 }
   0x2   :  { %14 = vsyncpa [#allocation7], 0  ;;  %s870_s27 = smov [#allocation8]   ;;  %s19_s8 = sshll.u32 %s950_s0, 4  ;;  %s20_s8 = int_to_ptr.hbm [resolvable:$true] %s19_s8 }
   0x3   :  { %s34_s28 = sshll.u32 %s870_s27, 4  ;;  %s871_s9 = smov 64   ;;  %s35_s28 = int_to_ptr.vmem [resolvable:$true] %s34_s28 }
   0x4   :  { %s872_s10 = smov 4   ;;  %s873_s11 = smov [#allocation5]  }
   0x5   :  { %40 = dma.hbm_to_vmem [thread:$0]  %s33_s26, 1024, %s35_s28, [#allocation9], %s871_s9, %s871_s9, %s872_s10  }
   0x6   :  { %s21_s12 = sshll.u32 %s873_s11, 4  ;;  %s874_s13 = smov 128   ;;  %s22_s12 = int_to_ptr.vmem [resolvable:$true] %s21_s12 }
   0x7   :  { %s875_s14 = smov 8   ;;  %s50_s16 = sshll.u32 %s956_s6, 4  ;;  %s51_s16 = int_to_ptr.hbm [resolvable:$true] %s50_s16 }
   0x8   :  { %27 = dma.hbm_to_vmem [thread:$0]  %s20_s8, 512, %s22_s12, [#allocation6], %s874_s13, %s874_s13, %s875_s14  }
   0x9   :  { %s876_s17 = smov [#allocation10]  }
   0xa   :  { %s52_s0 = sshll.u32 %s876_s17, 4  ;;  %s53_s0 = int_to_ptr.vmem [resolvable:$true] %s52_s0 }
   0xb   :  { %55 = dma.hbm_to_vmem [thread:$0]  %s51_s16, 32, %s53_s0, [#allocation9]  }
   0xc   :  { %860 = dma.done.wait [#allocation6], 512  }
   0xd   :  { %861 = vsyncadd [#allocation6], 4294966784 }
   0xe   :  { %862 = dma.done.wait [#allocation9], 1056  }
   0xf   :  { %863 = vsyncadd [#allocation9], 4294966240  ;;  %v675_v0 = vld [vmem:[#allocation8 + $0x38] sm:$0xff]  ;;  %v674_v1 = vld [vmem:[#allocation8 + $0x30] sm:$0xff]  ;;  %s75_s19 = sshll.u32 %s952_s2, 4  ;;  %s877_s20 = smov [#allocation2]   ;;  %s76_s19 = int_to_ptr.hbm [resolvable:$true] %s75_s19 }
  0x10   :  { %166 = vmatpush.bf16.msra.mxu0 %v675_v0  ;;  %692 = vmatpush.bf16.msra.mxu3 %v675_v0  ;;  %v673_v2 = vld [vmem:[#allocation8 + $0x28] sm:$0xff]  ;;  %v672_v3 = vld [vmem:[#allocation8 + $0x20] sm:$0xff]  ;;  %v671_v4 = vld [vmem:[#allocation8 + $0x18] sm:$0xff]  ;;  %s77_s21 = sshll.u32 %s877_s20, 4  ;;  %s89_s24 = sshll.u32 %s953_s3, 4  ;;  %s78_s21 = int_to_ptr.vmem [resolvable:$true] %s77_s21  ;;  %s90_s24 = int_to_ptr.hbm [resolvable:$true] %s89_s24 }
  0x11   :  { %v670_v5 = vld [vmem:[#allocation8 + $0x10] sm:$0xff]  ;;  %v669_v6 = vld [vmem:[#allocation8 + $0x8] sm:$0xff]  ;;  %v668_v7 = vld [vmem:[#allocation8] sm:$0xff]  ;;  %80 = dma.hbm_to_vmem [thread:$0]  %s76_s19, 1024, %s78_s21, [#allocation4] }
  0x12   :  { %v95_v8 = vld [vmem:[#allocation5] sm:$0xff]  ;;  %v96_v9 = vld [vmem:[#allocation5 + $0x8] sm:$0xff]  ;;  %v97_v10 = vld [vmem:[#allocation5 + $0x10] sm:$0xff]  ;;  %s878_s25 = smov [#allocation3]  }
  0x13   :  { %v98_v11 = vld [vmem:[#allocation5 + $0x18] sm:$0xff]  ;;  %v116_v12 = vpack.c.bf16 %v96_v9, %v95_v8  ;;  %s91_s26 = sshll.u32 %s878_s25, 4  ;;  %v115_v51 = vld [vmem:[%s954_s4] sm:$0x3]  ;;  %s92_s26 = int_to_ptr.vmem [resolvable:$true] %s91_s26 }
  0x14   :  { %167 = vmatpush.bf16.msra.mxu0 %v674_v1  ;;  %693 = vmatpush.bf16.msra.mxu3 %v674_v1  ;;  %v117_v13 = vpack.c.bf16 %v98_v11, %v97_v10  ;;  %94 = dma.hbm_to_vmem [thread:$0]  %s90_s24, 1024, %s92_s26, [#allocation4 + $0x1] }
  0x18   :  { %168 = vmatpush.bf16.msra.mxu0 %v673_v2  ;;  %694 = vmatpush.bf16.msra.mxu3 %v673_v2 }
  0x1c   :  { %169 = vmatpush.bf16.msra.mxu0 %v672_v3  ;;  %695 = vmatpush.bf16.msra.mxu3 %v672_v3 }
  0x20   :  { %170 = vmatpush.bf16.msra.mxu0 %v671_v4  ;;  %696 = vmatpush.bf16.msra.mxu3 %v671_v4 }
  0x24   :  { %171 = vmatpush.bf16.msra.mxu0 %v670_v5  ;;  %697 = vmatpush.bf16.msra.mxu3 %v670_v5 }
  0x28   :  { %172 = vmatpush.bf16.msra.mxu0 %v669_v6  ;;  %698 = vmatpush.bf16.msra.mxu3 %v669_v6 }
  0x2c   :  { %173 = vmatpush.bf16.msra.mxu0 %v668_v7  ;;  %699 = vmatpush.bf16.msra.mxu3 %v668_v7 }
  0x2f   :  { %174 = vmatmul.bf16.vlgmr.msra.gmra.mxu0 %v116_v12  ;;  %179 = vmatmul.bf16.vlgmr.msra.gmra.mxu3 %v117_v13 }
  0xac   :  { %v175_v14 = vpop.f32.mrf.mxu0 }
  0xad   :  { %v195_v17 = vmul.f32 %v175_v14, %v175_v14 }
  0xb2   :  { %v180_v15 = vpop.f32.mrf.mxu3 }
  0xb3   :  { %v197_v21 = vmul.f32 %v180_v15, %v180_v15 }
  0xb4   :  { %v177_v16 = vpop.f32.mrf.mxu0 }
  0xb5   :  { %v185_v18 = vadd.f32 %v177_v16, %v175_v14  ;;  %v196_v19 = vmul.f32 %v177_v16, %v177_v16 }
  0xb7   :  { %v199_v20 = vadd.f32 %v196_v19, %v195_v17  ;;  %v186_v22 = vadd.f32 %v185_v18, %v180_v15 }
  0xb9   :  { %v200_v26 = vadd.f32 %v199_v20, %v197_v21 }
  0xba   :  { %v182_v23 = vpop.f32.mrf.mxu3 }
  0xbb   :  { %v187_v24 = vadd.f32 %v186_v22, %v182_v23  ;;  %v198_v25 = vmul.f32 %v182_v23, %v182_v23 }
  0xbd   :  { %v188_v27 = vrot.slane %v187_v24, 4  ;;  %v201_v28 = vadd.f32 %v200_v26, %v198_v25 }
  0xbf   :  { %v189_v29 = vadd.f32 %v188_v27, %v187_v24  ;;  %v202_v30 = vrot.slane %v201_v28, 4 }
  0xc1   :  { %v190_v31 = vrot.slane %v189_v29, 2  ;;  %v203_v32 = vadd.f32 %v202_v30, %v201_v28 }
  0xc3   :  { %v191_v33 = vadd.f32 %v190_v31, %v189_v29  ;;  %v204_v34 = vrot.slane %v203_v32, 2 }
  0xc5   :  { %v192_v35 = vrot.slane %v191_v33, 1  ;;  %v205_v36 = vadd.f32 %v204_v34, %v203_v32 }
  0xc7   :  { %v193_v37 = vadd.f32 %v192_v35, %v191_v33  ;;  %v206_v38 = vrot.slane %v205_v36, 1 }
  0xc9   :  { %v194_v39 = vmul.f32 0.03125, %v193_v37  ;;  %v207_v40 = vadd.f32 %v206_v38, %v205_v36 }
  0xcb   :  { %v208_v41 = vmul.f32 0.03125, %v207_v40  ;;  %v209_v42 = vmul.f32 %v194_v39, %v194_v39 }
  0xcd   :  { %v210_v43 = vsub.f32 %v208_v41, %v209_v42 }
  0xcf   :  { %v211_v44 = vmax.f32 %v210_v43, 0.0 }
  0xd1   :  { %v212_v45 = vadd.f32 1e-05, %v211_v44 }
  0xd3   :  { %710 = vrsqrt.f32 %v212_v45  ;;  %vm219_vm1 = vweird.f32 %v212_v45 }
  0xd9   :  { %v711_v46 = vpop.eup %710 }
  0xda   :  { %v214_v47 = vmul.f32 %v711_v46, %v212_v45  ;;  %vm220_vm0 = vweird.f32 %v711_v46 }
  0xdb   :  { %vm221_vm2 = vmor %vm219_vm1, %vm220_vm0 }
  0xdc   :  { %v215_v48 = vmul.f32 %v711_v46, %v214_v47 }
  0xde   :  { %v216_v49 = vmul.f32 0.5, %v215_v48 }
  0xe0   :  { %v217_v50 = vsub.f32 1.5, %v216_v49 }
  0xe2   :  { %v218_v52 = vmul.f32 %v711_v46, %v217_v50 }
  0xe4   :  { %v222_v53 = vsel %vm221_vm2, %v711_v46, %v218_v52 }
  0xe5   :  { %v223_v54 = vmul.f32 %v222_v53, %v115_v51 }
  0xe7   :  { %v224_v55 = vmul.f32 %v223_v54, %v194_v39  ;;  %v229_v56 = vperm.slane %v223_v54, 0 }
  0xe9   :  { %v226_v57 = vrot.slane %v224_v55, 7  ;;  %v230_v59 = vmul.f32 %v229_v56, %v175_v14  ;;  %v231_v60 = vmul.f32 %v229_v56, %v177_v16  ;;  %v232_v61 = vmul.f32 %v229_v56, %v180_v15 }
  0xea   :  { %v233_v62 = vmul.f32 %v229_v56, %v182_v23 }
  0xeb   :  { %v228_v58 = vsub.f32 %v115_v51, %v226_v57 }
  0xed   :  { %v234_v63 = vperm.slane %v228_v58, 1 }
  0xef   :  { %v235_v0 = vadd.f32 %v234_v63, %v230_v59  ;;  %v236_v1 = vadd.f32 %v234_v63, %v231_v60  ;;  %v237_v2 = vadd.f32 %v234_v63, %v232_v61  ;;  %v238_v3 = vadd.f32 %v234_v63, %v233_v62 }
  0xf1   :  { %v239_v4 = vmax.f32 %v235_v0, 0.0  ;;  %v240_v5 = vmax.f32 %v236_v1, 0.0  ;;  %v241_v6 = vmax.f32 %v237_v2, 0.0  ;;  %v242_v7 = vmax.f32 %v238_v3, 0.0 }
  0xf2   :  { %864 = dma.done.wait [#allocation4], 1024 }
  0xf3   :  { %865 = vsyncadd [#allocation4], 4294966272  ;;  %v683_v8 = vld [vmem:[#allocation2 + $0x38] sm:$0xff]  ;;  %v682_v9 = vld [vmem:[#allocation2 + $0x30] sm:$0xff]  ;;  %v264_v16 = vpack.c.bf16 %v240_v5, %v239_v4  ;;  %v265_v17 = vpack.c.bf16 %v242_v7, %v241_v6 }
  0xf4   :  { %314 = vmatpush.bf16.msra.mxu1 %v683_v8  ;;  %v681_v10 = vld [vmem:[#allocation2 + $0x28] sm:$0xff]  ;;  %v680_v11 = vld [vmem:[#allocation2 + $0x20] sm:$0xff]  ;;  %v679_v12 = vld [vmem:[#allocation2 + $0x18] sm:$0xff] }
  0xf5   :  { %v678_v13 = vld [vmem:[#allocation2 + $0x10] sm:$0xff]  ;;  %v677_v14 = vld [vmem:[#allocation2 + $0x8] sm:$0xff]  ;;  %v676_v15 = vld [vmem:[#allocation2] sm:$0xff] }
  0xf6   :  { %v263_v55 = vld [vmem:[%s955_s5] sm:$0x3] }
  0xf8   :  { %315 = vmatpush.bf16.msra.mxu1 %v682_v9 }
  0xfc   :  { %316 = vmatpush.bf16.msra.mxu1 %v681_v10 }
 0x100   :  { %317 = vmatpush.bf16.msra.mxu1 %v680_v11 }
 0x104   :  { %318 = vmatpush.bf16.msra.mxu1 %v679_v12 }
 0x108   :  { %319 = vmatpush.bf16.msra.mxu1 %v678_v13 }
 0x10c   :  { %320 = vmatpush.bf16.msra.mxu1 %v677_v14 }
 0x110   :  { %321 = vmatpush.bf16.msra.mxu1 %v676_v15 }
 0x113   :  { %322 = vmatmul.bf16.vlgmr.msra.gmra.mxu1 %v264_v16 }
 0x123   :  { %327 = vmatmul.bf16.gmra.mxu1 %v265_v17 }
 0x190   :  { %v323_v18 = vpop.f32.mrf.mxu1 }
 0x191   :  { %v343_v22 = vmul.f32 %v323_v18, %v323_v18 }
 0x198   :  { %v325_v19 = vpop.f32.mrf.mxu1 }
 0x199   :  { %v344_v21 = vmul.f32 %v325_v19, %v325_v19  ;;  %v333_v23 = vadd.f32 %v325_v19, %v323_v18 }
 0x19b   :  { %v347_v25 = vadd.f32 %v344_v21, %v343_v22 }
 0x1a0   :  { %v328_v20 = vpop.f32.mrf.mxu1 }
 0x1a1   :  { %v345_v24 = vmul.f32 %v328_v20, %v328_v20  ;;  %v334_v26 = vadd.f32 %v333_v23, %v328_v20 }
 0x1a3   :  { %v348_v28 = vadd.f32 %v347_v25, %v345_v24 }
 0x1a8   :  { %v330_v27 = vpop.f32.mrf.mxu1 }
 0x1a9   :  { %v335_v29 = vadd.f32 %v334_v26, %v330_v27  ;;  %v346_v30 = vmul.f32 %v330_v27, %v330_v27 }
 0x1ab   :  { %v336_v31 = vrot.slane %v335_v29, 4  ;;  %v349_v32 = vadd.f32 %v348_v28, %v346_v30 }
 0x1ad   :  { %v337_v33 = vadd.f32 %v336_v31, %v335_v29  ;;  %v350_v34 = vrot.slane %v349_v32, 4 }
 0x1af   :  { %v338_v35 = vrot.slane %v337_v33, 2  ;;  %v351_v36 = vadd.f32 %v350_v34, %v349_v32 }
 0x1b1   :  { %v339_v37 = vadd.f32 %v338_v35, %v337_v33  ;;  %v352_v38 = vrot.slane %v351_v36, 2 }
 0x1b3   :  { %v340_v39 = vrot.slane %v339_v37, 1  ;;  %v353_v40 = vadd.f32 %v352_v38, %v351_v36 }
 0x1b5   :  { %v341_v41 = vadd.f32 %v340_v39, %v339_v37  ;;  %v354_v42 = vrot.slane %v353_v40, 1 }
 0x1b7   :  { %v342_v43 = vmul.f32 0.03125, %v341_v41  ;;  %v355_v44 = vadd.f32 %v354_v42, %v353_v40 }
 0x1b9   :  { %v356_v45 = vmul.f32 0.03125, %v355_v44  ;;  %v357_v46 = vmul.f32 %v342_v43, %v342_v43 }
 0x1bb   :  { %v358_v47 = vsub.f32 %v356_v45, %v357_v46 }
 0x1bd   :  { %v359_v48 = vmax.f32 %v358_v47, 0.0 }
 0x1bf   :  { %v360_v49 = vadd.f32 1e-05, %v359_v48 }
 0x1c1   :  { %712 = vrsqrt.f32 %v360_v49  ;;  %vm367_vm4 = vweird.f32 %v360_v49 }
 0x1c7   :  { %v713_v50 = vpop.eup %712 }
 0x1c8   :  { %v362_v51 = vmul.f32 %v713_v50, %v360_v49  ;;  %vm368_vm3 = vweird.f32 %v713_v50 }
 0x1c9   :  { %vm369_vm5 = vmor %vm367_vm4, %vm368_vm3 }
 0x1ca   :  { %v363_v52 = vmul.f32 %v713_v50, %v362_v51 }
 0x1cc   :  { %v364_v53 = vmul.f32 0.5, %v363_v52 }
 0x1ce   :  { %v365_v54 = vsub.f32 1.5, %v364_v53 }
 0x1d0   :  { %v366_v56 = vmul.f32 %v713_v50, %v365_v54 }
 0x1d2   :  { %v370_v57 = vsel %vm369_vm5, %v713_v50, %v366_v56 }
 0x1d3   :  { %v371_v58 = vmul.f32 %v370_v57, %v263_v55 }
 0x1d5   :  { %v372_v59 = vmul.f32 %v371_v58, %v342_v43  ;;  %v377_v60 = vperm.slane %v371_v58, 0 }
 0x1d7   :  { %v374_v61 = vrot.slane %v372_v59, 7  ;;  %v378_v63 = vmul.f32 %v377_v60, %v323_v18  ;;  %v379_v0 = vmul.f32 %v377_v60, %v325_v19  ;;  %v380_v1 = vmul.f32 %v377_v60, %v328_v20 }
 0x1d8   :  { %v381_v2 = vmul.f32 %v377_v60, %v330_v27 }
 0x1d9   :  { %v376_v62 = vsub.f32 %v263_v55, %v374_v61 }
 0x1db   :  { %v382_v3 = vperm.slane %v376_v62, 1 }
 0x1dd   :  { %v383_v4 = vadd.f32 %v382_v3, %v378_v63  ;;  %v384_v5 = vadd.f32 %v382_v3, %v379_v0  ;;  %v385_v6 = vadd.f32 %v382_v3, %v380_v1  ;;  %v386_v7 = vadd.f32 %v382_v3, %v381_v2 }
 0x1df   :  { %v387_v8 = vmax.f32 %v383_v4, 0.0  ;;  %v388_v9 = vmax.f32 %v384_v5, 0.0  ;;  %v389_v10 = vmax.f32 %v385_v6, 0.0  ;;  %v390_v11 = vmax.f32 %v386_v7, 0.0 }
 0x1e0   :  { %866 = dma.done.wait [#allocation4 + $0x1], 1024 }
 0x1e1   :  { %867 = vsyncadd [#allocation4 + $0x1], 4294966272  ;;  %v691_v12 = vld [vmem:[#allocation3 + $0x38] sm:$0xff]  ;;  %v690_v13 = vld [vmem:[#allocation3 + $0x30] sm:$0xff]  ;;  %v410_v20 = vpack.c.bf16 %v388_v9, %v387_v8  ;;  %v411_v21 = vpack.c.bf16 %v390_v11, %v389_v10  ;;  %s879_s5 = smov [#allocation11]   ;;  %s543_s8 = sshll.u32 %s957_s7, 4  ;;  %s544_s8 = int_to_ptr.hbm [resolvable:$true] %s543_s8 }
 0x1e2   :  { %460 = vmatpush.bf16.msra.mxu2 %v691_v12  ;;  %v689_v14 = vld [vmem:[#allocation3 + $0x28] sm:$0xff]  ;;  %v688_v15 = vld [vmem:[#allocation3 + $0x20] sm:$0xff]  ;;  %v687_v16 = vld [vmem:[#allocation3 + $0x18] sm:$0xff]  ;;  %s541_s28 = sshll.u32 %s879_s5, 4  ;;  %s542_s28 = int_to_ptr.vmem [resolvable:$true] %s541_s28 }
 0x1e3   :  { %v686_v17 = vld [vmem:[#allocation3 + $0x10] sm:$0xff]  ;;  %v685_v18 = vld [vmem:[#allocation3 + $0x8] sm:$0xff]  ;;  %v684_v19 = vld [vmem:[#allocation3] sm:$0xff] }
 0x1e4   :  { %v409_v59 = vld [vmem:[#allocation10] sm:$0x3] }
 0x1e6   :  { %461 = vmatpush.bf16.msra.mxu2 %v690_v13 }
 0x1ea   :  { %462 = vmatpush.bf16.msra.mxu2 %v689_v14 }
 0x1ee   :  { %463 = vmatpush.bf16.msra.mxu2 %v688_v15 }
 0x1f2   :  { %464 = vmatpush.bf16.msra.mxu2 %v687_v16 }
 0x1f6   :  { %465 = vmatpush.bf16.msra.mxu2 %v686_v17 }
 0x1fa   :  { %466 = vmatpush.bf16.msra.mxu2 %v685_v18 }
 0x1fe   :  { %467 = vmatpush.bf16.msra.mxu2 %v684_v19 }
 0x201   :  { %468 = vmatmul.bf16.vlgmr.msra.gmra.mxu2 %v410_v20 }
 0x211   :  { %473 = vmatmul.bf16.gmra.mxu2 %v411_v21 }
 0x284   :  { %v469_v22 = vpop.f32.mrf.mxu2 }
 0x285   :  { %v489_v26 = vmul.f32 %v469_v22, %v469_v22 }
 0x28c   :  { %v471_v23 = vpop.f32.mrf.mxu2 }
 0x28d   :  { %v490_v25 = vmul.f32 %v471_v23, %v471_v23  ;;  %v479_v27 = vadd.f32 %v471_v23, %v469_v22 }
 0x28f   :  { %v493_v29 = vadd.f32 %v490_v25, %v489_v26 }
 0x294   :  { %v474_v24 = vpop.f32.mrf.mxu2 }
 0x295   :  { %v491_v28 = vmul.f32 %v474_v24, %v474_v24  ;;  %v480_v30 = vadd.f32 %v479_v27, %v474_v24 }
 0x297   :  { %v494_v32 = vadd.f32 %v493_v29, %v491_v28 }
 0x29c   :  { %v476_v31 = vpop.f32.mrf.mxu2 }
 0x29d   :  { %v481_v33 = vadd.f32 %v480_v30, %v476_v31  ;;  %v492_v34 = vmul.f32 %v476_v31, %v476_v31 }
 0x29f   :  { %v482_v35 = vrot.slane %v481_v33, 4  ;;  %v495_v36 = vadd.f32 %v494_v32, %v492_v34 }
 0x2a1   :  { %v483_v37 = vadd.f32 %v482_v35, %v481_v33  ;;  %v496_v38 = vrot.slane %v495_v36, 4 }
 0x2a3   :  { %v484_v39 = vrot.slane %v483_v37, 2  ;;  %v497_v40 = vadd.f32 %v496_v38, %v495_v36 }
 0x2a5   :  { %v485_v41 = vadd.f32 %v484_v39, %v483_v37  ;;  %v498_v42 = vrot.slane %v497_v40, 2 }
 0x2a7   :  { %v486_v43 = vrot.slane %v485_v41, 1  ;;  %v499_v44 = vadd.f32 %v498_v42, %v497_v40 }
 0x2a9   :  { %v487_v45 = vadd.f32 %v486_v43, %v485_v41  ;;  %v500_v46 = vrot.slane %v499_v44, 1 }
 0x2ab   :  { %v488_v47 = vmul.f32 0.03125, %v487_v45  ;;  %v501_v48 = vadd.f32 %v500_v46, %v499_v44 }
 0x2ad   :  { %v502_v49 = vmul.f32 0.03125, %v501_v48  ;;  %v503_v50 = vmul.f32 %v488_v47, %v488_v47 }
 0x2af   :  { %v504_v51 = vsub.f32 %v502_v49, %v503_v50 }
 0x2b1   :  { %v505_v52 = vmax.f32 %v504_v51, 0.0 }
 0x2b3   :  { %v506_v53 = vadd.f32 1e-05, %v505_v52 }
 0x2b5   :  { %714 = vrsqrt.f32 %v506_v53  ;;  %vm513_vm7 = vweird.f32 %v506_v53 }
 0x2bb   :  { %v715_v54 = vpop.eup %714 }
 0x2bc   :  { %v508_v55 = vmul.f32 %v715_v54, %v506_v53  ;;  %vm514_vm6 = vweird.f32 %v715_v54 }
 0x2bd   :  { %vm515_vm8 = vmor %vm513_vm7, %vm514_vm6 }
 0x2be   :  { %v509_v56 = vmul.f32 %v715_v54, %v508_v55 }
 0x2c0   :  { %v510_v57 = vmul.f32 0.5, %v509_v56 }
 0x2c2   :  { %v511_v58 = vsub.f32 1.5, %v510_v57 }
 0x2c4   :  { %v512_v60 = vmul.f32 %v715_v54, %v511_v58 }
 0x2c6   :  { %v516_v61 = vsel %vm515_vm8, %v715_v54, %v512_v60 }
 0x2c7   :  { %v517_v62 = vmul.f32 %v516_v61, %v409_v59 }
 0x2c9   :  { %v518_v63 = vmul.f32 %v517_v62, %v488_v47  ;;  %v523_v1 = vperm.slane %v517_v62, 0 }
 0x2cb   :  { %v520_v0 = vrot.slane %v518_v63, 7  ;;  %v527_v3 = vmul.f32 %v523_v1, %v476_v31  ;;  %v524_v5 = vmul.f32 %v523_v1, %v469_v22  ;;  %v525_v6 = vmul.f32 %v523_v1, %v471_v23 }
 0x2cc   :  { %v526_v7 = vmul.f32 %v523_v1, %v474_v24 }
 0x2cd   :  { %v522_v2 = vsub.f32 %v409_v59, %v520_v0 }
 0x2cf   :  { %v528_v4 = vperm.slane %v522_v2, 1 }
 0x2d1   :  { %v532_v8 = vadd.f32 %v528_v4, %v527_v3  ;;  %v529_v9 = vadd.f32 %v528_v4, %v524_v5  ;;  %v530_v10 = vadd.f32 %v528_v4, %v525_v6  ;;  %v531_v11 = vadd.f32 %v528_v4, %v526_v7 }
 0x2d3   :  { %536 = vst [vmem:[#allocation11 + $0x18] sm:$0xff] %v532_v8 }
 0x2d4   :  { %533 = vst [vmem:[#allocation11] sm:$0xff] %v529_v9 }
 0x2d5   :  { %534 = vst [vmem:[#allocation11 + $0x8] sm:$0xff] %v530_v10 }
 0x2d6   :  { %535 = vst [vmem:[#allocation11 + $0x10] sm:$0xff] %v531_v11 }
 0x2d7   :  { %549 = dma.vmem_to_hbm [thread:$0]  %s542_s28, 512, %s544_s8, [#allocation7], %s874_s13, %s874_s13, %s875_s14  }
 0x2d8   :  { %868 = dma.done.wait [#allocation7], 512  }
 0x2d9   :  { %869 = vsyncadd [#allocation7], 4294966784 }
 0x2da   :  { %554 = vsyncpa [#allocation6], 1 }
 0x2db   :  { %555 = vsyncpa [#allocation9], 1 }
 0x2dc   :  { %556 = vsyncpa [#allocation7], 1 }
 0x2dd   :  { %557 = vsyncmov [#allocation4] }
 0x2e0   :  { %s558_s9 = vpop.sfrf %557 }
 0x2e1   :  { %p666_p0 = scmp.ne.s32.totalorder %s558_s9, 0 }
 0x2e3   :  { %562 = shalt.err (%p666_p0)  }
 0x2e4   :  { %564 = vsyncmov [#allocation4 + $0x1] }
 0x2e7   :  { %s565_s7 = vpop.sfrf %564 }
 0x2e8   :  { %p667_p1 = scmp.ne.s32.totalorder %s565_s7, 0 }
 0x2ea   :  { %569 = shalt.err (%p667_p1)  }

</bundles_post_ra>
